<compile_context>
chip_gen: v7x
topology: tpu7x:2x2x1
jax: 0.10.0
libtpu: 0.0.40
codegen_flags: <defaults>
</compile_context>

<pallas_src>
import jax
import jax.numpy as jnp
from jax import lax
from jax.experimental import pallas as pl
from jax.experimental.pallas import tpu as pltpu


def _round_up(x, m):
    return (x + m - 1) // m * m


def _mish(v):
    # Numerically-stable softplus: max(v,0) + log1p(exp(-|v|))
    sp = jnp.maximum(v, 0.0) + jnp.log1p(jnp.exp(-jnp.abs(v)))
    return v * jnp.tanh(sp)


def disc_kernel(x_ref, w1_ref, b1_ref, w2_ref, b2_ref, w3_ref, b3_ref,
                w4_ref, b4_ref, out_ref):
    h = _mish(jnp.dot(x_ref[...], w1_ref[...],
                      preferred_element_type=jnp.float32) + b1_ref[...])
    h = _mish(jnp.dot(h, w2_ref[...],
                      preferred_element_type=jnp.float32) + b2_ref[...])
    h = _mish(jnp.dot(h, w3_ref[...],
                      preferred_element_type=jnp.float32) + b3_ref[...])
    out_ref[...] = jnp.dot(h, w4_ref[...],
                           preferred_element_type=jnp.float32) + b4_ref[...]


def discriminator_forward(x, params):
    """x: [B, seq_length] f32. Returns logits [B, 1] f32."""
    B, L = x.shape
    S = params["w1"].shape[1]
    S2 = params["w2"].shape[1]
    S4 = params["w3"].shape[1]

    # Lane-dense padded sizes (multiples of 128).
    Lp = _round_up(L, 128)
    Sp = _round_up(S, 128)
    S2p = _round_up(S2, 128)
    S4p = _round_up(S4, 128)
    Op = 128  # output dim 1 -> 128 so the final store is a full-lane write

    # Batch tile: fill MXU rows for large batches, minimal sublane padding
    # for small ones.
    TB = 256 if B >= 256 else _round_up(B, 8)
    Bp = _round_up(B, TB)

    def pad2(a, r, c):
        return jnp.pad(a, ((0, r - a.shape[0]), (0, c - a.shape[1])))

    xp = pad2(x, Bp, Lp)
    w1p, b1p = pad2(params["w1"], Lp, Sp), pad2(params["b1"], 1, Sp)
    w2p, b2p = pad2(params["w2"], Sp, S2p), pad2(params["b2"], 1, S2p)
    w3p, b3p = pad2(params["w3"], S2p, S4p), pad2(params["b3"], 1, S4p)
    w4p, b4p = pad2(params["w4"], S4p, Op), pad2(params["b4"], 1, Op)

    grid = (Bp // TB,)

    def resident(shape):
        # Whole (small) array stays in VMEM across all grid steps.
        return pl.BlockSpec(shape, lambda i: (0, 0))

    flops = 2 * Bp * (Lp * Sp + Sp * S2p + S2p * S4p + S4p * Op)
    transcendentals = 3 * Bp * (Sp + S2p + S4p)  # exp + log1p + tanh per Mish elem
    bytes_accessed = 4 * (Bp * Lp + Bp * Op
                          + Lp * Sp + Sp * S2p + S2p * S4p + S4p * Op
                          + Sp + S2p + S4p + Op)

    out_padded = pl.pallas_call(
        disc_kernel,
        out_shape=jax.ShapeDtypeStruct((Bp, Op), jnp.float32),
        grid_spec=pltpu.PrefetchScalarGridSpec(
            num_scalar_prefetch=0,
            grid=grid,
            in_specs=[
                pl.BlockSpec((TB, Lp), lambda i: (i, 0)),   # x tile
                resident((Lp, Sp)), resident((1, Sp)),       # layer 1
                resident((Sp, S2p)), resident((1, S2p)),     # layer 2
                resident((S2p, S4p)), resident((1, S4p)),    # layer 3
                resident((S4p, Op)), resident((1, Op)),      # layer 4
            ],
            out_specs=pl.BlockSpec((TB, Op), lambda i: (i, 0)),
        ),
        compiler_params=pltpu.CompilerParams(
            dimension_semantics=("parallel",),
            vmem_limit_bytes=32 << 20,
        ),
        cost_estimate=pl.CostEstimate(
            flops=flops,
            transcendentals=transcendentals,
            bytes_accessed=bytes_accessed,
        ),
    )(xp, w1p, b1p, w2p, b2p, w3p, b3p, w4p, b4p)

    return out_padded[:B, :1]


def xavier_normal(key, fan_in, fan_out):
    std = jnp.sqrt(2.0 / (fan_in + fan_out))
    # Stored [in, out] (transpose of PyTorch's [out, in]).
    return std * jax.random.normal(key, (fan_in, fan_out), dtype=jnp.float32)


def linear_bias(key, fan_in, fan_out):
    # PyTorch default Linear bias init: U(-1/sqrt(fan_in), 1/sqrt(fan_in)).
    bound = 1.0 / jnp.sqrt(jnp.float32(fan_in))
    return jax.random.uniform(key, (1, fan_out), dtype=jnp.float32,
                              minval=-bound, maxval=bound)


def init_params(key, seq_length, sample_length):
    s2 = sample_length // 2
    s4 = sample_length // 4
    ks = jax.random.split(key, 8)
    return {
        "w1": xavier_normal(ks[0], seq_length, sample_length),
        "b1": linear_bias(ks[1], seq_length, sample_length),
        "w2": xavier_normal(ks[2], sample_length, s2),
        "b2": linear_bias(ks[3], sample_length, s2),
        "w3": xavier_normal(ks[4], s2, s4),
        "b3": linear_bias(ks[5], s2, s4),
        "w4": xavier_normal(ks[6], s4, 1),
        "b4": linear_bias(ks[7], s4, 1),
    }


if __name__ == "__main__":
    # Small shapes consistent with the module's forward.
    B = 8
    seq_length = 32
    sample_length = 16

    root = jax.random.PRNGKey(0)
    k_param, k_x = jax.random.split(root, 2)

    params = init_params(k_param, seq_length, sample_length)
    x = jax.random.normal(k_x, (B, seq_length), dtype=jnp.float32)

    out = discriminator_forward(x, params)
    jax.block_until_ready(out)
    assert out.shape == (B, 1)

    # Pure-JAX reference of the same math (highest precision matmuls).
    def mish_ref(v):
        return v * jnp.tanh(jax.nn.softplus(v))

    hp = lax.Precision.HIGHEST
    h = mish_ref(jnp.dot(x, params["w1"], precision=hp) + params["b1"])
    h = mish_ref(jnp.dot(h, params["w2"], precision=hp) + params["b2"])
    h = mish_ref(jnp.dot(h, params["w3"], precision=hp) + params["b3"])
    ref = jnp.dot(h, params["w4"], precision=hp) + params["b4"]

    assert jnp.allclose(out, ref, atol=1e-4, rtol=1e-4), (
        f"max abs err {jnp.max(jnp.abs(out - ref))}")

    print("KERNEL_OK")
</pallas_src>

<mosaic_0001>
module attributes {stable_mosaic.version = 11 : i64} {
  func.func @disc_kernel(%arg0: i32, %arg1: memref<8x128xf32, #tpu.memory_space<vmem>>, %arg2: memref<128x128xf32, #tpu.memory_space<vmem>>, %arg3: memref<1x128xf32, #tpu.memory_space<vmem>>, %arg4: memref<128x128xf32, #tpu.memory_space<vmem>>, %arg5: memref<1x128xf32, #tpu.memory_space<vmem>>, %arg6: memref<128x128xf32, #tpu.memory_space<vmem>>, %arg7: memref<1x128xf32, #tpu.memory_space<vmem>>, %arg8: memref<128x128xf32, #tpu.memory_space<vmem>>, %arg9: memref<1x128xf32, #tpu.memory_space<vmem>>, %arg10: memref<8x128xf32, #tpu.memory_space<vmem>>) attributes {dimension_semantics = [#tpu.dimension_semantics<parallel>], iteration_bounds = array<i64: 1>, scalar_prefetch = 0 : i64, scratch_operands = 0 : i64, tpu.core_type = #tpu.core_type<tc>, window_params = [{transform_indices = @transform_0, window_bounds = array<i64: 8, 128>}, {pipeline_mode = #tpu.pipeline_mode<synchronous>, transform_indices = @transform_1, window_bounds = array<i64: 128, 128>}, {pipeline_mode = #tpu.pipeline_mode<synchronous>, transform_indices = @transform_2, window_bounds = array<i64: 1, 128>}, {pipeline_mode = #tpu.pipeline_mode<synchronous>, transform_indices = @transform_3, window_bounds = array<i64: 128, 128>}, {pipeline_mode = #tpu.pipeline_mode<synchronous>, transform_indices = @transform_4, window_bounds = array<i64: 1, 128>}, {pipeline_mode = #tpu.pipeline_mode<synchronous>, transform_indices = @transform_5, window_bounds = array<i64: 128, 128>}, {pipeline_mode = #tpu.pipeline_mode<synchronous>, transform_indices = @transform_6, window_bounds = array<i64: 1, 128>}, {pipeline_mode = #tpu.pipeline_mode<synchronous>, transform_indices = @transform_7, window_bounds = array<i64: 128, 128>}, {pipeline_mode = #tpu.pipeline_mode<synchronous>, transform_indices = @transform_8, window_bounds = array<i64: 1, 128>}, {transform_indices = @transform_9, window_bounds = array<i64: 8, 128>}]} {
    %c0 = arith.constant 0 : index
    %c0_0 = arith.constant 0 : index
    %0 = vector.load %arg1[%c0, %c0_0] : memref<8x128xf32, #tpu.memory_space<vmem>>, vector<8x128xf32>
    %c0_1 = arith.constant 0 : index
    %c0_2 = arith.constant 0 : index
    %1 = vector.load %arg2[%c0_1, %c0_2] : memref<128x128xf32, #tpu.memory_space<vmem>>, vector<128x128xf32>
    %cst = arith.constant dense<0.000000e+00> : vector<8x128xf32>
    %2 = tpu.matmul %0, %1, %cst {dimension_numbers = #tpu.dot_dimension_numbers<[1], [0], [0], [1], [0, 0, 1, 1], [], []>} : vector<8x128xf32>, vector<128x128xf32>, vector<8x128xf32> -> vector<8x128xf32>
    %c0_3 = arith.constant 0 : index
    %c0_4 = arith.constant 0 : index
    %3 = vector.load %arg3[%c0_3, %c0_4] : memref<1x128xf32, #tpu.memory_space<vmem>>, vector<1x128xf32>
    %4 = vector.broadcast %3 : vector<1x128xf32> to vector<8x128xf32>
    %5 = arith.addf %2, %4 : vector<8x128xf32>
    %cst_5 = arith.constant 0.000000e+00 : f32
    %6 = vector.broadcast %cst_5 : f32 to vector<8x128xf32>
    %7 = arith.maximumf %5, %6 : vector<8x128xf32>
    %8 = math.absf %5 : vector<8x128xf32>
    %cst_6 = arith.constant 0.000000e+00 : f32
    %9 = vector.broadcast %cst_6 : f32 to vector<8x128xf32>
    %10 = arith.subf %9, %8 : vector<8x128xf32>
    %11 = math.exp %10 : vector<8x128xf32>
    %12 = math.log1p %11 : vector<8x128xf32>
    %13 = arith.addf %7, %12 : vector<8x128xf32>
    %14 = math.tanh %13 : vector<8x128xf32>
    %15 = arith.mulf %5, %14 : vector<8x128xf32>
    %c0_7 = arith.constant 0 : index
    %c0_8 = arith.constant 0 : index
    %16 = vector.load %arg4[%c0_7, %c0_8] : memref<128x128xf32, #tpu.memory_space<vmem>>, vector<128x128xf32>
    %cst_9 = arith.constant dense<0.000000e+00> : vector<8x128xf32>
    %17 = tpu.matmul %15, %16, %cst_9 {dimension_numbers = #tpu.dot_dimension_numbers<[1], [0], [0], [1], [0, 0, 1, 1], [], []>} : vector<8x128xf32>, vector<128x128xf32>, vector<8x128xf32> -> vector<8x128xf32>
    %c0_10 = arith.constant 0 : index
    %c0_11 = arith.constant 0 : index
    %18 = vector.load %arg5[%c0_10, %c0_11] : memref<1x128xf32, #tpu.memory_space<vmem>>, vector<1x128xf32>
    %19 = vector.broadcast %18 : vector<1x128xf32> to vector<8x128xf32>
    %20 = arith.addf %17, %19 : vector<8x128xf32>
    %cst_12 = arith.constant 0.000000e+00 : f32
    %21 = vector.broadcast %cst_12 : f32 to vector<8x128xf32>
    %22 = arith.maximumf %20, %21 : vector<8x128xf32>
    %23 = math.absf %20 : vector<8x128xf32>
    %cst_13 = arith.constant 0.000000e+00 : f32
    %24 = vector.broadcast %cst_13 : f32 to vector<8x128xf32>
    %25 = arith.subf %24, %23 : vector<8x128xf32>
    %26 = math.exp %25 : vector<8x128xf32>
    %27 = math.log1p %26 : vector<8x128xf32>
    %28 = arith.addf %22, %27 : vector<8x128xf32>
    %29 = math.tanh %28 : vector<8x128xf32>
    %30 = arith.mulf %20, %29 : vector<8x128xf32>
    %c0_14 = arith.constant 0 : index
    %c0_15 = arith.constant 0 : index
    %31 = vector.load %arg6[%c0_14, %c0_15] : memref<128x128xf32, #tpu.memory_space<vmem>>, vector<128x128xf32>
    %cst_16 = arith.constant dense<0.000000e+00> : vector<8x128xf32>
    %32 = tpu.matmul %30, %31, %cst_16 {dimension_numbers = #tpu.dot_dimension_numbers<[1], [0], [0], [1], [0, 0, 1, 1], [], []>} : vector<8x128xf32>, vector<128x128xf32>, vector<8x128xf32> -> vector<8x128xf32>
    %c0_17 = arith.constant 0 : index
    %c0_18 = arith.constant 0 : index
    %33 = vector.load %arg7[%c0_17, %c0_18] : memref<1x128xf32, #tpu.memory_space<vmem>>, vector<1x128xf32>
    %34 = vector.broadcast %33 : vector<1x128xf32> to vector<8x128xf32>
    %35 = arith.addf %32, %34 : vector<8x128xf32>
    %cst_19 = arith.constant 0.000000e+00 : f32
    %36 = vector.broadcast %cst_19 : f32 to vector<8x128xf32>
    %37 = arith.maximumf %35, %36 : vector<8x128xf32>
    %38 = math.absf %35 : vector<8x128xf32>
    %cst_20 = arith.constant 0.000000e+00 : f32
    %39 = vector.broadcast %cst_20 : f32 to vector<8x128xf32>
    %40 = arith.subf %39, %38 : vector<8x128xf32>
    %41 = math.exp %40 : vector<8x128xf32>
    %42 = math.log1p %41 : vector<8x128xf32>
    %43 = arith.addf %37, %42 : vector<8x128xf32>
    %44 = math.tanh %43 : vector<8x128xf32>
    %45 = arith.mulf %35, %44 : vector<8x128xf32>
    %c0_21 = arith.constant 0 : index
    %c0_22 = arith.constant 0 : index
    %46 = vector.load %arg8[%c0_21, %c0_22] : memref<128x128xf32, #tpu.memory_space<vmem>>, vector<128x128xf32>
    %cst_23 = arith.constant dense<0.000000e+00> : vector<8x128xf32>
    %47 = tpu.matmul %45, %46, %cst_23 {dimension_numbers = #tpu.dot_dimension_numbers<[1], [0], [0], [1], [0, 0, 1, 1], [], []>} : vector<8x128xf32>, vector<128x128xf32>, vector<8x128xf32> -> vector<8x128xf32>
    %c0_24 = arith.constant 0 : index
    %c0_25 = arith.constant 0 : index
    %48 = vector.load %arg9[%c0_24, %c0_25] : memref<1x128xf32, #tpu.memory_space<vmem>>, vector<1x128xf32>
    %49 = vector.broadcast %48 : vector<1x128xf32> to vector<8x128xf32>
    %50 = arith.addf %47, %49 : vector<8x128xf32>
    %c0_26 = arith.constant 0 : index
    %c0_27 = arith.constant 0 : index
    %51 = vector.load %arg10[%c0_26, %c0_27] : memref<8x128xf32, #tpu.memory_space<vmem>>, vector<8x128xf32>
    tpu.vector_store %arg10[%c0_26, %c0_27], %50 {strides = array<i32>} : memref<8x128xf32, #tpu.memory_space<vmem>>, vector<8x128xf32>,
    return
  }
  func.func @transform_0(%arg0: i32) -> (i32, i32) {
    %c0_i32 = arith.constant 0 : i32
    %c0_i32_0 = arith.constant 0 : i32
    return %arg0, %c0_i32 : i32, i32
  }
  func.func @transform_1(%arg0: i32) -> (i32, i32) {
    %c0_i32 = arith.constant 0 : i32
    %c0_i32_0 = arith.constant 0 : i32
    %c0_i32_1 = arith.constant 0 : i32
    return %c0_i32, %c0_i32_0 : i32, i32
  }
  func.func @transform_2(%arg0: i32) -> (i32, i32) {
    %c0_i32 = arith.constant 0 : i32
    %c0_i32_0 = arith.constant 0 : i32
    %c0_i32_1 = arith.constant 0 : i32
    return %c0_i32, %c0_i32_0 : i32, i32
  }
  func.func @transform_3(%arg0: i32) -> (i32, i32) {
    %c0_i32 = arith.constant 0 : i32
    %c0_i32_0 = arith.constant 0 : i32
    %c0_i32_1 = arith.constant 0 : i32
    return %c0_i32, %c0_i32_0 : i32, i32
  }
  func.func @transform_4(%arg0: i32) -> (i32, i32) {
    %c0_i32 = arith.constant 0 : i32
    %c0_i32_0 = arith.constant 0 : i32
    %c0_i32_1 = arith.constant 0 : i32
    return %c0_i32, %c0_i32_0 : i32, i32
  }
  func.func @transform_5(%arg0: i32) -> (i32, i32) {
    %c0_i32 = arith.constant 0 : i32
    %c0_i32_0 = arith.constant 0 : i32
    %c0_i32_1 = arith.constant 0 : i32
    return %c0_i32, %c0_i32_0 : i32, i32
  }
  func.func @transform_6(%arg0: i32) -> (i32, i32) {
    %c0_i32 = arith.constant 0 : i32
    %c0_i32_0 = arith.constant 0 : i32
    %c0_i32_1 = arith.constant 0 : i32
    return %c0_i32, %c0_i32_0 : i32, i32
  }
  func.func @transform_7(%arg0: i32) -> (i32, i32) {
    %c0_i32 = arith.constant 0 : i32
    %c0_i32_0 = arith.constant 0 : i32
    %c0_i32_1 = arith.constant 0 : i32
    return %c0_i32, %c0_i32_0 : i32, i32
  }
  func.func @transform_8(%arg0: i32) -> (i32, i32) {
    %c0_i32 = arith.constant 0 : i32
    %c0_i32_0 = arith.constant 0 : i32
    %c0_i32_1 = arith.constant 0 : i32
    return %c0_i32, %c0_i32_0 : i32, i32
  }
  func.func @transform_9(%arg0: i32) -> (i32, i32) {
    %c0_i32 = arith.constant 0 : i32
    %c0_i32_0 = arith.constant 0 : i32
    return %arg0, %c0_i32 : i32, i32
  }
}

</mosaic_0001>

<bundles_post_ra>
// kernel: tpu_custom_call.1
= control target key start
LH: loop header
LB: loop body
LE: loop exit
PB: predicated region body
PF: predicated region fallthrough
CT: control target
= control target key end

     0   :  { %14 = vsyncpa [#allocation3], 0  ;;  %s1215_s0 = inlined_call_operand.hbm [shape: f32[8,128], index: 0, kind: input, shape index: {}]   ;;  %s1216_s1 = inlined_call_operand.hbm [shape: f32[128,128], index: 1, kind: input, shape index: {}]   ;;  %s1217_s2 = inlined_call_operand.vmem [shape: f32[1,128], index: 2, kind: input, shape index: {}]   ;;  %s1218_s3 = inlined_call_operand.hbm [shape: f32[128,128], index: 3, kind: input, shape index: {}]   ;;  %s1219_s4 = inlined_call_operand.vmem [shape: f32[1,128], index: 4, kind: input, shape index: {}]   ;;  %s1220_s5 = inlined_call_operand.hbm [shape: f32[128,128], index: 5, kind: input, shape index: {}]   ;;  %s1221_s6 = inlined_call_operand.vmem [shape: f32[1,128], index: 6, kind: input, shape index: {}]   ;;  %s1222_s7 = inlined_call_operand.hbm [shape: f32[128,128], index: 7, kind: input, shape index: {}]   ;;  %s1223_s8 = inlined_call_operand.vmem [shape: f32[1,128], index: 8, kind: input, shape index: {}]   ;;  %s1224_s9 = inlined_call_operand.hbm [shape: f32[8,128], index: 9, kind: output, shape index: {}]  }
   0x1   :  { %15 = vsyncpa [#allocation6], 0 }
   0x2   :  { %16 = vsyncpa [#allocation9], 0 }
   0x3   :  { %17 = vsyncpa [#allocation4], 0  ;;  %s1018_s30 = smov [#allocation5]   ;;  %s878_s13 = scalar_lea.hbm %s1216_s1, 2048 }
   0x4   :  { %s33_s10 = sshll.u32 %s1018_s30, 4  ;;  %p879_p0 = scmp.ne.s32.totalorder %s1216_s1, %s878_s13  ;;  %s34_s10 = int_to_ptr.vmem [resolvable:$true] %s33_s10 }
   0x5   :  { %p882_p1 = scmp.lt.u32.totalorder %s878_s13, %s1216_s1 }
   0x7   :  { %p884_p2 = pnand %p882_p1, %p879_p0 }
   0x9   :  { %887 = shalt.err (!%p884_p2)
}
   0xa   :  { %s888_s18 = scalar_lea.vmem %s34_s10, 2048  ;;  %p893_p4 = scmp.lt.s32.totalorder %s34_s10, %s34_s10 }
   0xb   :  { %p889_p3 = scmp.ne.s32.totalorder %s34_s10, %s888_s18  ;;  %p894_p5 = scmp.lt.s32.totalorder %s888_s18, %s888_s18 }
   0xd   :  { %p895_p6 = por %p894_p5, %p893_p4 }
   0xf   :  { %p896_p7 = pnand %p895_p6, %p889_p3 }
  0x11   :  { %899 = shalt.err (!%p896_p7)
}
  0x12   :  { %s1019_s19 = smov 128   ;;  %s1020_s20 = smov 8  }
  0x13   :  { %39 = dma.hbm_to_vmem [thread:$0]  %s1216_s1, 2048, %s34_s10, [#allocation6], %s1019_s19, %s1019_s19, %s1020_s20  }
  0x14   :  { %s1021_s23 = smov [#allocation8]   ;;  %s1022_s25 = smov [#allocation2]  }
  0x15   :  { %s61_s24 = sshll.u32 %s1021_s23, 4  ;;  %s24_s26 = sshll.u32 %s1022_s25, 4  ;;  %s62_s24 = int_to_ptr.vmem [resolvable:$true] %s61_s24  ;;  %s25_s26 = int_to_ptr.vmem [resolvable:$true] %s24_s26 }
  0x16   :  { %s900_s29 = scalar_lea.hbm %s1220_s5, 2048 }
  0x17   :  { %p901_p8 = scmp.ne.s32.totalorder %s1220_s5, %s900_s29  ;;  %p904_p9 = scmp.lt.u32.totalorder %s900_s29, %s1220_s5 }
  0x19   :  { %p906_p10 = pnand %p904_p9, %p901_p8 }
  0x1b   :  { %909 = shalt.err (!%p906_p10)
}
  0x1c   :  { %s910_s1 = scalar_lea.vmem %s62_s24, 2048  ;;  %p915_p12 = scmp.lt.s32.totalorder %s62_s24, %s62_s24 }
  0x1d   :  { %p911_p11 = scmp.ne.s32.totalorder %s62_s24, %s910_s1  ;;  %p916_p13 = scmp.lt.s32.totalorder %s910_s1, %s910_s1 }
  0x1f   :  { %p917_p0 = por %p916_p13, %p915_p12 }
  0x21   :  { %p918_p1 = pnand %p917_p0, %p911_p11 }
  0x23   :  { %921 = shalt.err (!%p918_p1)
}
  0x24   :  { %67 = dma.hbm_to_vmem [thread:$0]  %s1220_s5, 2048, %s62_s24, [#allocation9], %s1019_s19, %s1019_s19, %s1020_s20  }
  0x25   :  { %s922_s17 = scalar_lea.hbm %s1215_s0, 128 }
  0x26   :  { %p923_p2 = scmp.ne.s32.totalorder %s1215_s0, %s922_s17  ;;  %p926_p3 = scmp.lt.u32.totalorder %s922_s17, %s1215_s0 }
  0x28   :  { %p928_p4 = pnand %p926_p3, %p923_p2 }
  0x2a   :  { %931 = shalt.err (!%p928_p4)
}
  0x2b   :  { %s932_s25 = scalar_lea.vmem %s25_s26, 128  ;;  %p937_p6 = scmp.lt.s32.totalorder %s25_s26, %s25_s26 }
  0x2c   :  { %p933_p5 = scmp.ne.s32.totalorder %s25_s26, %s932_s25  ;;  %p938_p7 = scmp.lt.s32.totalorder %s932_s25, %s932_s25 }
  0x2e   :  { %p939_p8 = por %p938_p7, %p937_p6 }
  0x30   :  { %p940_p9 = pnand %p939_p8, %p933_p5 }
  0x32   :  { %943 = shalt.err (!%p940_p9)
}
  0x33   :  { %27 = dma.hbm_to_vmem [thread:$0]  %s1215_s0, 128, %s25_s26, [#allocation3]  }
  0x34   :  { %s1023_s27 = smov [#allocation7]   ;;  %s1024_s29 = smov [#allocation10]  }
  0x35   :  { %s47_s28 = sshll.u32 %s1023_s27, 4  ;;  %s75_s30 = sshll.u32 %s1024_s29, 4  ;;  %s48_s28 = int_to_ptr.vmem [resolvable:$true] %s47_s28  ;;  %s76_s30 = int_to_ptr.vmem [resolvable:$true] %s75_s30 }
  0x36   :  { %s944_s13 = scalar_lea.hbm %s1218_s3, 2048 }
  0x37   :  { %p945_p10 = scmp.ne.s32.totalorder %s1218_s3, %s944_s13  ;;  %p948_p11 = scmp.lt.u32.totalorder %s944_s13, %s1218_s3 }
  0x39   :  { %p950_p12 = pnand %p948_p11, %p945_p10 }
  0x3b   :  { %953 = shalt.err (!%p950_p12)
}
  0x3c   :  { %s954_s0 = scalar_lea.vmem %s48_s28, 2048  ;;  %p959_p0 = scmp.lt.s32.totalorder %s48_s28, %s48_s28 }
  0x3d   :  { %p955_p13 = scmp.ne.s32.totalorder %s48_s28, %s954_s0  ;;  %p960_p1 = scmp.lt.s32.totalorder %s954_s0, %s954_s0 }
  0x3f   :  { %p961_p2 = por %p960_p1, %p959_p0 }
  0x41   :  { %p962_p3 = pnand %p961_p2, %p955_p13 }
  0x43   :  { %965 = shalt.err (!%p962_p3)
}
  0x44   :  { %53 = dma.hbm_to_vmem [thread:$0]  %s1218_s3, 2048, %s48_s28, [#allocation6], %s1019_s19, %s1019_s19, %s1020_s20  }
  0x45   :  { %s966_s21 = scalar_lea.hbm %s1222_s7, 2048 }
  0x46   :  { %p967_p4 = scmp.ne.s32.totalorder %s1222_s7, %s966_s21  ;;  %p970_p5 = scmp.lt.u32.totalorder %s966_s21, %s1222_s7 }
  0x48   :  { %p972_p6 = pnand %p970_p5, %p967_p4 }
  0x4a   :  { %975 = shalt.err (!%p972_p6)
}
  0x4b   :  { %s976_s24 = scalar_lea.vmem %s76_s30, 2048  ;;  %p981_p8 = scmp.lt.s32.totalorder %s76_s30, %s76_s30 }
  0x4c   :  { %p977_p7 = scmp.ne.s32.totalorder %s76_s30, %s976_s24  ;;  %p982_p9 = scmp.lt.s32.totalorder %s976_s24, %s976_s24 }
  0x4e   :  { %p983_p10 = por %p982_p9, %p981_p8 }
  0x50   :  { %p984_p11 = pnand %p983_p10, %p977_p7 }
  0x52   :  { %987 = shalt.err (!%p984_p11)
}
  0x53   :  { %81 = dma.hbm_to_vmem [thread:$0]  %s1222_s7, 2048, %s76_s30, [#allocation9], %s1019_s19, %s1019_s19, %s1020_s20  }
  0x54   :  { %1010 = dma.done.wait [#allocation3], 128  }
  0x55   :  { %1011 = vsyncadd [#allocation3], 4294967168 }
  0x56   :  { %1012 = dma.done.wait [#allocation6], 4096  }
  0x57   :  { %1013 = vsyncadd [#allocation6], 4294963200 }
  0x58   :  { %1014 = dma.done.wait [#allocation9], 4096  }
  0x59   :  { %1015 = vsyncadd [#allocation9], 4294963200  ;;  %v1025_v0 = vmov 0.0|0.0   ;;  %vm1026_vm0 = vmmov 0   ;;  %v1027_v1 = vmov 0.0   ;;  %v100_v2 = vld [vmem:[#allocation5] sm:$0xff] }
  0x5a   :  { %753 = vmatprep.subr.bf16.mxu0 %v1025_v0  ;;  %645 = vmatprep.mubr.msk.f32.mxu0 %vm1026_vm0, %v1027_v1  ;;  %v101_v3 = vld [vmem:[#allocation5 + $0x8] sm:$0xff]  ;;  %v102_v4 = vld [vmem:[#allocation5 + $0x10] sm:$0xff]  ;;  %v103_v6 = vld [vmem:[#allocation5 + $0x18] sm:$0xff]  ;;  %s1028_s30 = smov [#allocation11]  }
  0x5b   :  { %777 = vmatprep.subr.bf16.mxu1 %v1025_v0  ;;  %680 = vmatprep.mubr.msk.f32.mxu1 %vm1026_vm0, %v1027_v1  ;;  %v754_v5 = vpack.c.bf16 %v101_v3, %v100_v2  ;;  %v757_v7 = vpack.c.bf16 %v103_v6, %v102_v4  ;;  %v104_v8 = vld [vmem:[#allocation5 + $0x20] sm:$0xff]  ;;  %v105_v9 = vld [vmem:[#allocation5 + $0x28] sm:$0xff]  ;;  %v106_v11 = vld [vmem:[#allocation5 + $0x30] sm:$0xff]  ;;  %s530_s11 = sshll.u32 %s1028_s30, 4  ;;  %s531_s11 = int_to_ptr.vmem [resolvable:$true] %s530_s11 }
  0x5c   :  { %v760_v10 = vpack.c.bf16 %v105_v9, %v104_v8  ;;  %v107_v12 = vld [vmem:[#allocation5 + $0x38] sm:$0xff]  ;;  %v108_v14 = vld [vmem:[#allocation5 + $0x40] sm:$0xff]  ;;  %v109_v15 = vld [vmem:[#allocation5 + $0x48] sm:$0xff]  ;;  %s988_s12 = scalar_lea.vmem %s531_s11, 128  ;;  %p993_p13 = scmp.lt.s32.totalorder %s531_s11, %s531_s11 }
  0x5d   :  { %755 = vmatpush3.bf16.msra.mxu0 %v754_v5  ;;  %v763_v13 = vpack.c.bf16 %v107_v12, %v106_v11  ;;  %v766_v16 = vpack.c.bf16 %v109_v15, %v108_v14  ;;  %v110_v17 = vld [vmem:[#allocation5 + $0x50] sm:$0xff]  ;;  %v111_v18 = vld [vmem:[#allocation5 + $0x58] sm:$0xff]  ;;  %v112_v20 = vld [vmem:[#allocation5 + $0x60] sm:$0xff]  ;;  %p989_p12 = scmp.ne.s32.totalorder %s531_s11, %s988_s12  ;;  %p994_p0 = scmp.lt.s32.totalorder %s988_s12, %s988_s12 }
  0x5e   :  { %756 = vmatprep.subr.bf16.mxu0 %v1025_v0  ;;  %v769_v19 = vpack.c.bf16 %v111_v18, %v110_v17  ;;  %v113_v21 = vld [vmem:[#allocation5 + $0x68] sm:$0xff]  ;;  %v114_v23 = vld [vmem:[#allocation5 + $0x70] sm:$0xff]  ;;  %v115_v24 = vld [vmem:[#allocation5 + $0x78] sm:$0xff] }
  0x5f   :  { %v772_v22 = vpack.c.bf16 %v113_v21, %v112_v20  ;;  %v775_v25 = vpack.c.bf16 %v115_v24, %v114_v23  ;;  %v99_v26 = vld [vmem:[#allocation2] sm:$0xff]  ;;  %v210_v27 = vld [vmem:[#allocation7] sm:$0xff]  ;;  %v211_v28 = vld [vmem:[#allocation7 + $0x8] sm:$0xff]  ;;  %p995_p1 = por %p994_p0, %p993_p13 }
  0x60   :  { %v778_v29 = vpack.c.bf16 %v211_v28, %v210_v27  ;;  %v212_v30 = vld [vmem:[#allocation7 + $0x10] sm:$0xff]  ;;  %v213_v31 = vld [vmem:[#allocation7 + $0x18] sm:$0xff]  ;;  %v214_v33 = vld [vmem:[#allocation7 + $0x20] sm:$0xff] }
  0x61   :  { %758 = vmatpush3.bf16.msra.mxu0 %v757_v7  ;;  %v781_v32 = vpack.c.bf16 %v213_v31, %v212_v30  ;;  %v215_v34 = vld [vmem:[#allocation7 + $0x28] sm:$0xff]  ;;  %v216_v36 = vld [vmem:[#allocation7 + $0x30] sm:$0xff]  ;;  %v217_v37 = vld [vmem:[#allocation7 + $0x38] sm:$0xff]  ;;  %p996_p2 = pnand %p995_p1, %p989_p12 }
  0x62   :  { %759 = vmatprep.subr.bf16.mxu0 %v1025_v0  ;;  %779 = vmatpush3.bf16.msra.mxu1 %v778_v29  ;;  %v784_v35 = vpack.c.bf16 %v215_v34, %v214_v33  ;;  %v787_v38 = vpack.c.bf16 %v217_v37, %v216_v36  ;;  %v218_v39 = vld [vmem:[#allocation7 + $0x40] sm:$0xff]  ;;  %v219_v40 = vld [vmem:[#allocation7 + $0x48] sm:$0xff]  ;;  %v220_v42 = vld [vmem:[#allocation7 + $0x50] sm:$0xff] }
  0x63   :  { %780 = vmatprep.subr.bf16.mxu1 %v1025_v0  ;;  %v790_v41 = vpack.c.bf16 %v219_v40, %v218_v39  ;;  %v221_v43 = vld [vmem:[#allocation7 + $0x58] sm:$0xff]  ;;  %v222_v45 = vld [vmem:[#allocation7 + $0x60] sm:$0xff]  ;;  %v223_v46 = vld [vmem:[#allocation7 + $0x68] sm:$0xff] }
  0x64   :  { %v793_v44 = vpack.c.bf16 %v221_v43, %v220_v42  ;;  %v796_v47 = vpack.c.bf16 %v223_v46, %v222_v45  ;;  %v224_v48 = vld [vmem:[#allocation7 + $0x70] sm:$0xff]  ;;  %v225_v49 = vld [vmem:[#allocation7 + $0x78] sm:$0xff]  ;;  %v320_v9 = vld [vmem:[#allocation8] sm:$0xff] }
  0x65   :  { %761 = vmatpush3.bf16.msra.mxu0 %v760_v10  ;;  %v799_v50 = vpack.c.bf16 %v225_v49, %v224_v48  ;;  %v541_v51 = vld [vmem:[%s1217_s2] ss:$0 sm:$0xff]  ;;  %v321_v10 = vld [vmem:[#allocation8 + $0x8] sm:$0xff]  ;;  %v322_v12 = vld [vmem:[#allocation8 + $0x10] sm:$0xff] }
  0x66   :  { %762 = vmatprep.subr.bf16.mxu0 %v1025_v0  ;;  %782 = vmatpush3.bf16.msra.mxu1 %v781_v32  ;;  %v802_v11 = vpack.c.bf16 %v321_v10, %v320_v9  ;;  %v324_v15 = vld [vmem:[#allocation8 + $0x20] sm:$0xff]  ;;  %v326_v18 = vld [vmem:[#allocation8 + $0x30] sm:$0xff]  ;;  %v329_v21 = vld [vmem:[#allocation8 + $0x48] sm:$0xff] }
  0x67   :  { %783 = vmatprep.subr.bf16.mxu1 %v1025_v0  ;;  %v328_v20 = vld [vmem:[#allocation8 + $0x40] sm:$0xff]  ;;  %v330_v23 = vld [vmem:[#allocation8 + $0x50] sm:$0xff]  ;;  %v331_v24 = vld [vmem:[#allocation8 + $0x58] sm:$0xff] }
  0x68   :  { %v333_v27 = vld [vmem:[#allocation8 + $0x68] sm:$0xff]  ;;  %v334_v29 = vld [vmem:[#allocation8 + $0x70] sm:$0xff]  ;;  %v335_v30 = vld [vmem:[#allocation8 + $0x78] sm:$0xff] }
  0x69   :  { %764 = vmatpush3.bf16.msra.mxu0 %v763_v13  ;;  %v323_v13 = vld [vmem:[#allocation8 + $0x18] sm:$0xff]  ;;  %v823_v31 = vpack.c.bf16 %v335_v30, %v334_v29  ;;  %v443_v9 = vld [vmem:[#allocation10 + $0x68] sm:$0xff] }
  0x6a   :  { %765 = vmatprep.subr.bf16.mxu0 %v1025_v0  ;;  %785 = vmatpush3.bf16.msra.mxu1 %v784_v35  ;;  %v805_v14 = vpack.c.bf16 %v323_v13, %v322_v12  ;;  %v542_v32 = vld [vmem:[%s1219_s4] ss:$0 sm:$0xff] }
  0x6b   :  { %786 = vmatprep.subr.bf16.mxu1 %v1025_v0  ;;  %v445_v12 = vld [vmem:[#allocation10 + $0x78] sm:$0xff] }
  0x6d   :  { %767 = vmatpush3.bf16.msra.mxu0 %v766_v16  ;;  %v325_v16 = vld [vmem:[#allocation8 + $0x28] sm:$0xff] }
  0x6e   :  { %768 = vmatprep.subr.bf16.mxu0 %v1025_v0  ;;  %788 = vmatpush3.bf16.msra.mxu1 %v787_v38  ;;  %v808_v17 = vpack.c.bf16 %v325_v16, %v324_v15 }
  0x6f   :  { %789 = vmatprep.subr.bf16.mxu1 %v1025_v0 }
  0x71   :  { %770 = vmatpush3.bf16.msra.mxu0 %v769_v19 }
  0x72   :  { %771 = vmatprep.subr.bf16.mxu0 %v1025_v0  ;;  %791 = vmatpush3.bf16.msra.mxu1 %v790_v41 }
  0x73   :  { %792 = vmatprep.subr.bf16.mxu1 %v1025_v0 }
  0x75   :  { %773 = vmatpush3.bf16.msra.mxu0 %v772_v22  ;;  %v814_v22 = vpack.c.bf16 %v329_v21, %v328_v20 }
  0x76   :  { %774 = vmatprep.subr.bf16.mxu0 %v1025_v0  ;;  %794 = vmatpush3.bf16.msra.mxu1 %v793_v44 }
  0x77   :  { %795 = vmatprep.subr.bf16.mxu1 %v1025_v0 }
  0x79   :  { %776 = vmatpush3.bf16.msra.mxu0 %v775_v25  ;;  %v817_v25 = vpack.c.bf16 %v331_v24, %v330_v23 }
  0x7a   :  { %801 = vmatprep.subr.bf16.mxu0 %v1025_v0  ;;  %797 = vmatpush3.bf16.msra.mxu1 %v796_v47 }
  0x7b   :  { %798 = vmatprep.subr.bf16.mxu1 %v1025_v0 }
  0x7c   :  { %646 = vmatmul.mubr.f32.vlgmr.msra.gmra.mrb[0].mxu0 %v99_v26  ;;  %v332_v26 = vld [vmem:[#allocation8 + $0x60] sm:$0xff] }
  0x7d   :  { %715 = vmatprep.mubr.msk.f32.mxu0 %vm1026_vm0, %v1027_v1  ;;  %803 = vmatpush3.bf16.msra.mxu0 %v802_v11  ;;  %v820_v28 = vpack.c.bf16 %v333_v27, %v332_v26  ;;  %v444_v11 = vld [vmem:[#allocation10 + $0x70] sm:$0xff] }
  0x7e   :  { %800 = vmatpush3.bf16.msra.mxu1 %v799_v50  ;;  %804 = vmatprep.subr.bf16.mxu0 %v1025_v0  ;;  %v847_v13 = vpack.c.bf16 %v445_v12, %v444_v11 }
  0x7f   :  { %825 = vmatprep.subr.bf16.mxu1 %v1025_v0 }
  0x81   :  { %806 = vmatpush3.bf16.msra.mxu0 %v805_v14  ;;  %v543_v14 = vld [vmem:[%s1221_s6] ss:$0 sm:$0xff] }
  0x82   :  { %807 = vmatprep.subr.bf16.mxu0 %v1025_v0 }
  0x85   :  { %809 = vmatpush3.bf16.msra.mxu0 %v808_v17 }
  0x86   :  { %810 = vmatprep.subr.bf16.mxu0 %v1025_v0 }
 0x14f   :  { %v189_v52 = vpop.f32.mrb[0].mxu0 }
 0x150   :  { %v190_v53 = vadd.f32 %v541_v51, %v189_v52  ;;  %v647_v54 = vpop.f32.mrb[1].mxu0  ;;  %v430_v52 = vld [vmem:[#allocation10] sm:$0xff] }
 0x152   :  { %v194_v55 = vand.u32 2147483647, %v190_v53  ;;  %v193_v4 = vmax.f32 %v190_v53, 0.0 }
 0x154   :  { %v195_v56 = vsub.f32 0.0, %v194_v55  ;;  %v432_v55 = vld [vmem:[#allocation10 + $0x10] sm:$0xff] }
 0x156   :  { %v196_v57 = vmul.f32 1.442695, %v195_v56  ;;  %v433_v56 = vld [vmem:[#allocation10 + $0x18] sm:$0xff] }
 0x158   :  { %860 = vpow2.f32 %v196_v57  ;;  %v829_v57 = vpack.c.bf16 %v433_v56, %v432_v55 }
 0x162   :  { %v861_v58 = vpop.eup %860 }
 0x163   :  { %v198_v59 = vadd.f32 1.0, %v861_v58  ;;  %v201_v60 = vmul.f32 -0.5, %v861_v58  ;;  %v204_v62 = vand.u32 2147483647, %v861_v58 }
 0x165   :  { %862 = vlog2.f32 %v198_v59  ;;  %v202_v61 = vadd.f32 1.0, %v201_v60  ;;  %vm205_vm1 = vcmp.lt.f32.partialorder %v204_v62, 0.0004427343  ;;  %v435_v59 = vld [vmem:[#allocation10 + $0x28] sm:$0xff]  ;;  %v437_v62 = vld [vmem:[#allocation10 + $0x38] sm:$0xff] }
 0x167   :  { %v203_v3 = vmul.f32 %v861_v58, %v202_v61  ;;  %v434_v58 = vld [vmem:[#allocation10 + $0x20] sm:$0xff]  ;;  %v436_v61 = vld [vmem:[#allocation10 + $0x30] sm:$0xff] }
 0x168   :  { %v832_v60 = vpack.c.bf16 %v435_v59, %v434_v58 }
 0x16f   :  { %v863_v63 = vpop.eup %862 }
 0x170   :  { %v200_v2 = vmul.f32 0.6931472, %v863_v63  ;;  %v835_v63 = vpack.c.bf16 %v437_v62, %v436_v61 }
 0x172   :  { %v206_v5 = vsel %vm205_vm1, %v203_v3, %v200_v2  ;;  %v438_v2 = vld [vmem:[#allocation10 + $0x40] sm:$0xff]  ;;  %v439_v3 = vld [vmem:[#allocation10 + $0x48] sm:$0xff] }
 0x173   :  { %v207_v6 = vadd.f32 %v206_v5, %v193_v4  ;;  %v838_v4 = vpack.c.bf16 %v439_v3, %v438_v2  ;;  %v440_v5 = vld [vmem:[#allocation10 + $0x50] sm:$0xff] }
 0x175   :  { %864 = vtanh.f32 %v207_v6  ;;  %v441_v6 = vld [vmem:[#allocation10 + $0x58] sm:$0xff] }
 0x17f   :  { %v865_v7 = vpop.eup %864 }
 0x180   :  { %v209_v8 = vmul.f32 %v865_v7, %v190_v53  ;;  %v431_v53 = vld [vmem:[#allocation10 + $0x8] sm:$0xff]  ;;  %v841_v7 = vpack.c.bf16 %v441_v6, %v440_v5 }
 0x181   :  { %v826_v54 = vpack.c.bf16 %v431_v53, %v430_v52 }
 0x182   :  { %681 = vmatmul.mubr.f32.vlgmr.msra.gmra.mrb[0].mxu1 %v209_v8  ;;  %v442_v8 = vld [vmem:[#allocation10 + $0x60] sm:$0xff] }
 0x183   :  { %750 = vmatprep.mubr.msk.f32.mxu1 %vm1026_vm0, %v1027_v1  ;;  %v327_v1 = vld [vmem:[#allocation8 + $0x38] sm:$0xff]  ;;  %827 = vmatpush3.bf16.msra.mxu1 %v826_v54  ;;  %v844_v10 = vpack.c.bf16 %v443_v9, %v442_v8 }
 0x184   :  { %v811_v19 = vpack.c.bf16 %v327_v1, %v326_v18  ;;  %828 = vmatprep.subr.bf16.mxu1 %v1025_v0 }
 0x186   :  { %812 = vmatpush3.bf16.msra.mxu0 %v811_v19 }
 0x187   :  { %813 = vmatprep.subr.bf16.mxu0 %v1025_v0  ;;  %830 = vmatpush3.bf16.msra.mxu1 %v829_v57 }
 0x188   :  { %831 = vmatprep.subr.bf16.mxu1 %v1025_v0 }
 0x18a   :  { %815 = vmatpush3.bf16.msra.mxu0 %v814_v22 }
 0x18b   :  { %816 = vmatprep.subr.bf16.mxu0 %v1025_v0  ;;  %833 = vmatpush3.bf16.msra.mxu1 %v832_v60 }
 0x18c   :  { %834 = vmatprep.subr.bf16.mxu1 %v1025_v0 }
 0x18e   :  { %818 = vmatpush3.bf16.msra.mxu0 %v817_v25 }
 0x18f   :  { %819 = vmatprep.subr.bf16.mxu0 %v1025_v0  ;;  %836 = vmatpush3.bf16.msra.mxu1 %v835_v63 }
 0x190   :  { %837 = vmatprep.subr.bf16.mxu1 %v1025_v0 }
 0x192   :  { %821 = vmatpush3.bf16.msra.mxu0 %v820_v28 }
 0x193   :  { %822 = vmatprep.subr.bf16.mxu0 %v1025_v0  ;;  %839 = vmatpush3.bf16.msra.mxu1 %v838_v4 }
 0x194   :  { %840 = vmatprep.subr.bf16.mxu1 %v1025_v0 }
 0x196   :  { %824 = vmatpush3.bf16.msra.mxu0 %v823_v31 }
 0x197   :  { %842 = vmatpush3.bf16.msra.mxu1 %v841_v7 }
 0x198   :  { %843 = vmatprep.subr.bf16.mxu1 %v1025_v0 }
 0x19b   :  { %845 = vmatpush3.bf16.msra.mxu1 %v844_v10 }
 0x19c   :  { %846 = vmatprep.subr.bf16.mxu1 %v1025_v0 }
 0x19f   :  { %848 = vmatpush3.bf16.msra.mxu1 %v847_v13 }
 0x255   :  { %v299_v33 = vpop.f32.mrb[0].mxu1 }
 0x256   :  { %v300_v34 = vadd.f32 %v542_v32, %v299_v33  ;;  %v682_v35 = vpop.f32.mrb[1].mxu1  ;;  %v544_v32 = vld [vmem:[%s1223_s8] ss:$0 sm:$0xff] }
 0x258   :  { %v304_v36 = vand.u32 2147483647, %v300_v34  ;;  %v303_v47 = vmax.f32 %v300_v34, 0.0 }
 0x25a   :  { %v305_v37 = vsub.f32 0.0, %v304_v36 }
 0x25c   :  { %v306_v38 = vmul.f32 1.442695, %v305_v37 }
 0x25e   :  { %866 = vpow2.f32 %v306_v38 }
 0x268   :  { %v867_v39 = vpop.eup %866 }
 0x269   :  { %v308_v40 = vadd.f32 1.0, %v867_v39  ;;  %v311_v41 = vmul.f32 -0.5, %v867_v39  ;;  %v314_v43 = vand.u32 2147483647, %v867_v39 }
 0x26b   :  { %868 = vlog2.f32 %v308_v40  ;;  %v312_v42 = vadd.f32 1.0, %v311_v41  ;;  %vm315_vm2 = vcmp.lt.f32.partialorder %v314_v43, 0.0004427343 }
 0x26d   :  { %v313_v46 = vmul.f32 %v867_v39, %v312_v42 }
 0x275   :  { %v869_v44 = vpop.eup %868 }
 0x276   :  { %v310_v45 = vmul.f32 0.6931472, %v869_v44 }
 0x278   :  { %v316_v48 = vsel %vm315_vm2, %v313_v46, %v310_v45 }
 0x279   :  { %v317_v49 = vadd.f32 %v316_v48, %v303_v47 }
 0x27b   :  { %870 = vtanh.f32 %v317_v49 }
 0x285   :  { %v871_v50 = vpop.eup %870 }
 0x286   :  { %v319_v51 = vmul.f32 %v871_v50, %v300_v34 }
 0x288   :  { %716 = vmatmul.mubr.f32.vlgmr.msra.gmra.mrb[2].mxu0 %v319_v51 }
 0x35b   :  { %v409_v15 = vpop.f32.mrb[2].mxu0 }
 0x35c   :  { %v410_v16 = vadd.f32 %v543_v14, %v409_v15  ;;  %v717_v17 = vpop.f32.mrb[3].mxu0 }
 0x35e   :  { %v414_v18 = vand.u32 2147483647, %v410_v16  ;;  %v413_v27 = vmax.f32 %v410_v16, 0.0 }
 0x360   :  { %v415_v1 = vsub.f32 0.0, %v414_v18 }
 0x362   :  { %v416_v19 = vmul.f32 1.442695, %v415_v1 }
 0x364   :  { %872 = vpow2.f32 %v416_v19 }
 0x36e   :  { %v873_v20 = vpop.eup %872 }
 0x36f   :  { %v418_v21 = vadd.f32 1.0, %v873_v20  ;;  %v421_v22 = vmul.f32 -0.5, %v873_v20  ;;  %v424_v23 = vand.u32 2147483647, %v873_v20 }
 0x371   :  { %874 = vlog2.f32 %v418_v21  ;;  %v422_v0 = vadd.f32 1.0, %v421_v22  ;;  %vm425_vm3 = vcmp.lt.f32.partialorder %v424_v23, 0.0004427343 }
 0x373   :  { %v423_v26 = vmul.f32 %v873_v20, %v422_v0 }
 0x37b   :  { %v875_v24 = vpop.eup %874 }
 0x37c   :  { %v420_v25 = vmul.f32 0.6931472, %v875_v24 }
 0x37e   :  { %v426_v28 = vsel %vm425_vm3, %v423_v26, %v420_v25 }
 0x37f   :  { %v427_v29 = vadd.f32 %v426_v28, %v413_v27 }
 0x381   :  { %876 = vtanh.f32 %v427_v29 }
 0x38b   :  { %v877_v30 = vpop.eup %876 }
 0x38c   :  { %v429_v31 = vmul.f32 %v877_v30, %v410_v16 }
 0x38e   :  { %751 = vmatmul.mubr.f32.vlgmr.msra.gmra.mrb[2].mxu1 %v429_v31 }
 0x461   :  { %v519_v33 = vpop.f32.mrb[2].mxu1 }
 0x462   :  { %v520_v34 = vadd.f32 %v544_v32, %v519_v33  ;;  %v752_v35 = vpop.f32.mrb[3].mxu1 }
 0x464   :  { %523 = vst [vmem:[#allocation11] sm:$0xff] %v520_v34 }
 0x465   :  { %999 = shalt.err (!%p996_p2)
}
 0x466   :  { %s1000_s10 = scalar_lea.hbm %s1224_s9, 128 }
 0x467   :  { %p1001_p3 = scmp.ne.s32.totalorder %s1224_s9, %s1000_s10  ;;  %p1004_p4 = scmp.lt.u32.totalorder %s1000_s10, %s1224_s9 }
 0x469   :  { %p1006_p5 = pnand %p1004_p4, %p1001_p3 }
 0x46b   :  { %1009 = shalt.err (!%p1006_p5)
}
 0x46c   :  { %533 = dma.vmem_to_hbm [thread:$0]  %s531_s11, 128, %s1224_s9, [#allocation4]  }
 0x46d   :  { %1016 = dma.done.wait [#allocation4], 128  }
 0x46e   :  { %1017 = vsyncadd [#allocation4], 4294967168 }
 0x46f   :  { %537 = vsyncpa [#allocation3], 1 }
 0x470   :  { %538 = vsyncpa [#allocation6], 1 }
 0x471   :  { %539 = vsyncpa [#allocation9], 1 }
 0x472   :  { %540 = vsyncpa [#allocation4], 1 }

</bundles_post_ra>
